<compile_context>
chip_gen: v6e
topology: v6e:2x2x1
jax: 0.10.0
libtpu: 0.0.40
codegen_flags: <defaults>
</compile_context>

<pallas_src>
import functools

import jax
import jax.numpy as jnp
from jax.experimental import pallas as pl
from jax.experimental.pallas import tpu as pltpu


# --------------------------------------------------------------------------- #
# Kernels
# --------------------------------------------------------------------------- #
def _hs_gate(l1, min_val, max_val):
    # Skip the dead add when min_val == 0 (trace-time decision).
    z = l1 if min_val == 0.0 else l1 + min_val
    gate = jnp.clip(z, min_val, max_val)
    # NOTE: the reference divides by the literal 6 (l3 = l2 / 6), independent
    # of the max_val hyperparameter -- kept as-is to match module semantics.
    return l1 * gate * (1.0 / 6.0)


def _hs_linear_kernel(x_ref, w_ref, o_ref, *, min_val, max_val):
    """f32 or bf16 weight path. MXU matmul with f32 accumulation."""
    w = w_ref[...]
    x = x_ref[...]
    if w.dtype == jnp.bfloat16:
        x = x.astype(jnp.bfloat16)  # native bf16 MXU path
    l1 = jnp.dot(x, w, preferred_element_type=jnp.float32)
    o_ref[...] = _hs_gate(l1, min_val, max_val).astype(o_ref.dtype)


def _hs_linear_int8_kernel(x_ref, w_ref, scale_ref, o_ref, *, min_val, max_val):
    """int8 weight + per-output-channel f32 scale (dequant AFTER the dot)."""
    # int8 -> f32 cast is exact (|q| <= 127); compute is negligible here.
    w = w_ref[...].astype(jnp.float32)
    l1 = jnp.dot(x_ref[...], w, preferred_element_type=jnp.float32)
    l1 = l1 * scale_ref[...]  # (1, N) broadcast over rows
    o_ref[...] = _hs_gate(l1, min_val, max_val).astype(o_ref.dtype)


# --------------------------------------------------------------------------- #
# Weight preparation (done ONCE at parameter-load time, not per call)
# --------------------------------------------------------------------------- #
def _default_weight_mode():
    """int8 on v5e/v6e (native int MXU, slowest HBM), bf16 on v7x/others."""
    try:
        kind = jax.devices()[0].device_kind.lower()
    except Exception:
        return "bf16"
    if "v5" in kind or "v6" in kind:
        return "int8"
    return "bf16"  # v7x has no int MXU path; bf16 (fp8 would be the next step)


def prepare_weight(w, mode):
    """w: PyTorch-layout (N, K) f32 Linear weight -> (w_t, scale) for the kernel."""
    w_t = jnp.asarray(w).T  # (K, N), pre-transposed once
    if mode == "f32":
        return w_t.astype(jnp.float32), None
    if mode == "bf16":
        return w_t.astype(jnp.bfloat16), None
    if mode == "int8":
        amax = jnp.max(jnp.abs(w_t), axis=0, keepdims=True)       # (1, N)
        scale = (amax / 127.0).astype(jnp.float32)
        scale = jnp.where(scale == 0.0, 1.0, scale)
        w_q = jnp.clip(jnp.round(w_t / scale), -127.0, 127.0).astype(jnp.int8)
        return w_q, scale
    raise ValueError(f"unknown weight mode: {mode}")


# --------------------------------------------------------------------------- #
# Wrapper
# --------------------------------------------------------------------------- #
def hardswish_linear(x, w_t, scale=None, *, min_val=0.0, max_val=6.0):
    """x: (B, K) f32; w_t: (K, N) pre-transposed weight (f32 / bf16 / int8);
    scale: (1, N) f32 per-output-channel dequant scale (required iff int8)."""
    B, K = x.shape
    Kw, N = w_t.shape
    assert K == Kw
    assert N % 128 == 0, "keep the output lane-dense (N multiple of 128)"

    vmem = pl.BlockSpec(memory_space=pltpu.MemorySpace.VMEM)

    if w_t.dtype == jnp.int8:
        assert scale is not None and scale.shape == (1, N)
        kernel = functools.partial(
            _hs_linear_int8_kernel, min_val=float(min_val), max_val=float(max_val))
        operands = (x, w_t, scale)
    else:
        kernel = functools.partial(
            _hs_linear_kernel, min_val=float(min_val), max_val=float(max_val))
        operands = (x, w_t)

    bytes_accessed = sum(a.size * a.dtype.itemsize for a in operands) + B * N * 4
    cost = pl.CostEstimate(
        flops=2 * B * K * N, transcendentals=0, bytes_accessed=bytes_accessed)

    return pl.pallas_call(
        kernel,
        out_shape=jax.ShapeDtypeStruct((B, N), jnp.float32),
        in_specs=[vmem] * len(operands),
        out_specs=vmem,
        cost_estimate=cost,
    )(*operands)


# --------------------------------------------------------------------------- #
# Reference (pure JAX) and self-test
# --------------------------------------------------------------------------- #
def reference(x, w, min_val, max_val):
    l1 = x @ w.T
    l2 = l1 * jnp.clip(l1 + min_val, min_val, max_val)
    return l2 / 6.0


if __name__ == "__main__":
    key = jax.random.PRNGKey(0)
    kx, kw = jax.random.split(key)

    B, K, N = 1, 256, 512            # matches Linear(256, 512), x1 = randn(1, 256)
    MIN_VAL, MAX_VAL = 0.0, 6.0      # module hyperparameters (fixed at init)

    x = jax.random.normal(kx, (B, K), dtype=jnp.float32)
    bound = 1.0 / jnp.sqrt(K)        # deterministic "Linear" weight, PyTorch shape (N, K)
    w = jax.random.uniform(kw, (N, K), dtype=jnp.float32, minval=-bound, maxval=bound)

    ref = reference(x, w, MIN_VAL, MAX_VAL)

    # --- exact-numerics path (f32 weight) ------------------------------------
    w_f32, _ = prepare_weight(w, "f32")
    out_f32 = jax.block_until_ready(
        hardswish_linear(x, w_f32, min_val=MIN_VAL, max_val=MAX_VAL))
    assert out_f32.shape == (B, N)
    assert jnp.allclose(out_f32, ref, atol=1e-5, rtol=1e-5), "f32 path mismatch"

    # --- bf16 weight path (minimum reduced precision) -------------------------
    w_bf16, _ = prepare_weight(w, "bf16")
    out_bf16 = jax.block_until_ready(
        hardswish_linear(x, w_bf16, min_val=MIN_VAL, max_val=MAX_VAL))
    assert jnp.allclose(out_bf16, ref, atol=2e-2, rtol=2e-2), "bf16 path mismatch"

    # --- device-default path (int8+scale on v5e/v6e, bf16 on v7x/other) -------
    mode = _default_weight_mode()
    w_def, scale_def = prepare_weight(w, mode)
    out_def = jax.block_until_ready(
        hardswish_linear(x, w_def, scale_def, min_val=MIN_VAL, max_val=MAX_VAL))
    assert jnp.allclose(out_def, ref, atol=5e-2, rtol=5e-2), f"{mode} path mismatch"

    print("KERNEL_OK")
</pallas_src>

<mosaic_0001>
module attributes {stable_mosaic.version = 11 : i64} {
  func.func @_hs_linear_kernel(%arg0: memref<1x256xf32, #tpu.memory_space<vmem>>, %arg1: memref<256x512xf32, #tpu.memory_space<vmem>>, %arg2: memref<1x512xf32, #tpu.memory_space<vmem>>) attributes {dimension_semantics = [], scalar_prefetch = 0 : i64, scratch_operands = 0 : i64, tpu.core_type = #tpu.core_type<tc>} {
    %c0 = arith.constant 0 : index
    %c0_0 = arith.constant 0 : index
    %0 = vector.load %arg1[%c0, %c0_0] : memref<256x512xf32, #tpu.memory_space<vmem>>, vector<256x512xf32>
    %c0_1 = arith.constant 0 : index
    %c0_2 = arith.constant 0 : index
    %1 = vector.load %arg0[%c0_1, %c0_2] : memref<1x256xf32, #tpu.memory_space<vmem>>, vector<1x256xf32>
    %cst = arith.constant dense<0.000000e+00> : vector<1x512xf32>
    %2 = tpu.matmul %1, %0, %cst {dimension_numbers = #tpu.dot_dimension_numbers<[1], [0], [0], [1], [0, 0, 1, 1], [], []>} : vector<1x256xf32>, vector<256x512xf32>, vector<1x512xf32> -> vector<1x512xf32>
    %cst_3 = arith.constant 0.000000e+00 : f32
    %cst_4 = arith.constant 6.000000e+00 : f32
    %3 = vector.broadcast %cst_3 : f32 to vector<1x512xf32>
    %4 = arith.maximumf %3, %2 : vector<1x512xf32>
    %5 = vector.broadcast %cst_4 : f32 to vector<1x512xf32>
    %6 = arith.minimumf %5, %4 : vector<1x512xf32>
    %7 = arith.mulf %2, %6 : vector<1x512xf32>
    %cst_5 = arith.constant 0.166666672 : f32
    %8 = vector.broadcast %cst_5 : f32 to vector<1x512xf32>
    %9 = arith.mulf %7, %8 : vector<1x512xf32>
    %c0_6 = arith.constant 0 : index
    %c0_7 = arith.constant 0 : index
    %10 = vector.load %arg2[%c0_6, %c0_7] : memref<1x512xf32, #tpu.memory_space<vmem>>, vector<1x512xf32>
    tpu.vector_store %arg2[%c0_6, %c0_7], %9 {strides = array<i32>} : memref<1x512xf32, #tpu.memory_space<vmem>>, vector<1x512xf32>,
    return
  }
}

</mosaic_0001>

<bundles_post_ra>
// kernel: tpu_custom_call.1
= control target key start
LH: loop header
LB: loop body
LE: loop exit
PB: predicated region body
PF: predicated region fallthrough
CT: control target
= control target key end

     0   :  { %7 = vsyncpa [#allocation3], 0  ;;  %s495_s0 = inlined_call_operand.hbm [shape: f32[1,256], index: 0, kind: input, shape index: {}]   ;;  %s496_s1 = inlined_call_operand.hbm [shape: f32[256,512], index: 1, kind: input, shape index: {}]   ;;  %s497_s2 = inlined_call_operand.hbm [shape: f32[1,512], index: 2, kind: output, shape index: {}]  }
   0x1   :  { %8 = vsyncpa [#allocation6], 0 }
   0x2   :  { %9 = vsyncpa [#allocation4], 0  ;;  %s458_s9 = smov [#allocation2]   ;;  %s459_s11 = smov [#allocation5]  }
   0x3   :  { %s16_s10 = sshll.u32 %s458_s9, 4  ;;  %s25_s12 = sshll.u32 %s459_s11, 4  ;;  %s17_s10 = int_to_ptr.vmem [resolvable:$true] %s16_s10  ;;  %s26_s12 = int_to_ptr.vmem [resolvable:$true] %s25_s12 }
   0x4   :  { %s400_s13 = scalar_lea.vmem %s17_s10, 32  ;;  %p405_p1 = scmp.lt.s32.totalorder %s17_s10, %s17_s10 }
   0x5   :  { %p401_p0 = scmp.ne.s32.totalorder %s17_s10, %s400_s13  ;;  %p406_p2 = scmp.lt.s32.totalorder %s400_s13, %s400_s13 }
   0x7   :  { %p407_p3 = por %p406_p2, %p405_p1 }
   0x9   :  { %p408_p4 = pnand %p407_p3, %p401_p0 }
   0xb   :  { %411 = shalt.err (!%p408_p4)
}
   0xc   :  { %19 = dma.hbm_to_vmem [thread:$0]  %s495_s0, 32, %s17_s10, [#allocation3]  }
   0xd   :  { %s420_s16 = scalar_lea.vmem %s26_s12, 16384  ;;  %p425_p6 = scmp.lt.s32.totalorder %s26_s12, %s26_s12 }
   0xe   :  { %p421_p5 = scmp.ne.s32.totalorder %s26_s12, %s420_s16  ;;  %p426_p7 = scmp.lt.s32.totalorder %s420_s16, %s420_s16 }
  0x10   :  { %p427_p8 = por %p426_p7, %p425_p6 }
  0x12   :  { %p428_p9 = pnand %p427_p8, %p421_p5 }
  0x14   :  { %431 = shalt.err (!%p428_p9)
}
  0x15   :  { %s460_s17 = smov 512   ;;  %s461_s18 = smov 32  }
  0x16   :  { %31 = dma.hbm_to_vmem [thread:$0]  %s496_s1, 16384, %s26_s12, [#allocation6], %s460_s17, %s460_s17, %s461_s18  }
  0x17   :  { %452 = dma.done.wait [#allocation3], 32  }
  0x18   :  { %453 = vsyncadd [#allocation3], 4294967264 }
  0x19   :  { %454 = dma.done.wait [#allocation6], 16384  }
  0x1a   :  { %455 = vsyncadd [#allocation6], 4294950912  ;;  %v99_v0 = vld [vmem:[#allocation5 + $0x1e8] sm:$0xff]  ;;  %v101_v1 = vld [vmem:[#allocation5 + $0x1f8] sm:$0xff]  ;;  %s463_s0 = smov [#allocation7]  }
  0x1b   :  { %v98_v2 = vld [vmem:[#allocation5 + $0x1e0] sm:$0xff]  ;;  %178 = vmatprep.subr.mxu0 %v99_v0  ;;  %249 = vmatprep.subr.mxu1 %v101_v1  ;;  %v100_v3 = vld [vmem:[#allocation5 + $0x1f0] sm:$0xff]  ;;  %v95_v4 = vld [vmem:[#allocation5 + $0x1c8] sm:$0xff]  ;;  %s376_s1 = sshll.u32 %s463_s0, 4  ;;  %s377_s1 = int_to_ptr.vmem [resolvable:$true] %s376_s1 }
  0x1c   :  { %v97_v5 = vld [vmem:[#allocation5 + $0x1d8] sm:$0xff]  ;;  %179 = vmatpush1.msra.mxu0 %v98_v2  ;;  %250 = vmatpush1.msra.mxu1 %v100_v3  ;;  %v94_v6 = vld [vmem:[#allocation5 + $0x1c0] sm:$0xff]  ;;  %v96_v7 = vld [vmem:[#allocation5 + $0x1d0] sm:$0xff]  ;;  %s432_s21 = scalar_lea.vmem %s377_s1, 64  ;;  %p437_p11 = scmp.lt.s32.totalorder %s377_s1, %s377_s1 }
  0x1d   :  { %v91_v8 = vld [vmem:[#allocation5 + $0x1a8] sm:$0xff]  ;;  %180 = vmatprep.subr.mxu0 %v95_v4  ;;  %251 = vmatprep.subr.mxu1 %v97_v5  ;;  %v93_v9 = vld [vmem:[#allocation5 + $0x1b8] sm:$0xff]  ;;  %v90_v10 = vld [vmem:[#allocation5 + $0x1a0] sm:$0xff]  ;;  %p433_p10 = scmp.ne.s32.totalorder %s377_s1, %s432_s21  ;;  %p438_p12 = scmp.lt.s32.totalorder %s432_s21, %s432_s21 }
  0x1e   :  { %v92_v11 = vld [vmem:[#allocation5 + $0x1b0] sm:$0xff]  ;;  %181 = vmatpush1.msra.mxu0 %v94_v6  ;;  %252 = vmatpush1.msra.mxu1 %v96_v7  ;;  %v87_v12 = vld [vmem:[#allocation5 + $0x188] sm:$0xff]  ;;  %v89_v13 = vld [vmem:[#allocation5 + $0x198] sm:$0xff] }
  0x1f   :  { %182 = vmatprep.subr.mxu0 %v91_v8  ;;  %253 = vmatprep.subr.mxu1 %v93_v9  ;;  %v86_v14 = vld [vmem:[#allocation5 + $0x180] sm:$0xff]  ;;  %v88_v15 = vld [vmem:[#allocation5 + $0x190] sm:$0xff]  ;;  %v83_v16 = vld [vmem:[#allocation5 + $0x168] sm:$0xff]  ;;  %p439_p13 = por %p438_p12, %p437_p11 }
  0x20   :  { %183 = vmatpush1.msra.mxu0 %v90_v10  ;;  %254 = vmatpush1.msra.mxu1 %v92_v11  ;;  %v85_v17 = vld [vmem:[#allocation5 + $0x178] sm:$0xff]  ;;  %v82_v18 = vld [vmem:[#allocation5 + $0x160] sm:$0xff]  ;;  %v84_v19 = vld [vmem:[#allocation5 + $0x170] sm:$0xff] }
  0x21   :  { %184 = vmatprep.subr.mxu0 %v87_v12  ;;  %255 = vmatprep.subr.mxu1 %v89_v13  ;;  %v79_v20 = vld [vmem:[#allocation5 + $0x148] sm:$0xff]  ;;  %v81_v21 = vld [vmem:[#allocation5 + $0x158] sm:$0xff]  ;;  %v78_v22 = vld [vmem:[#allocation5 + $0x140] sm:$0xff]  ;;  %p440_p0 = pnand %p439_p13, %p433_p10 }
  0x22   :  { %185 = vmatpush1.msra.mxu0 %v86_v14  ;;  %256 = vmatpush1.msra.mxu1 %v88_v15  ;;  %v80_v23 = vld [vmem:[#allocation5 + $0x150] sm:$0xff]  ;;  %v75_v24 = vld [vmem:[#allocation5 + $0x128] sm:$0xff]  ;;  %v77_v25 = vld [vmem:[#allocation5 + $0x138] sm:$0xff] }
  0x23   :  { %186 = vmatprep.subr.mxu0 %v83_v16  ;;  %257 = vmatprep.subr.mxu1 %v85_v17  ;;  %v74_v26 = vld [vmem:[#allocation5 + $0x120] sm:$0xff]  ;;  %v76_v27 = vld [vmem:[#allocation5 + $0x130] sm:$0xff]  ;;  %v71_v28 = vld [vmem:[#allocation5 + $0x108] sm:$0xff] }
  0x24   :  { %187 = vmatpush1.msra.mxu0 %v82_v18  ;;  %258 = vmatpush1.msra.mxu1 %v84_v19  ;;  %v73_v29 = vld [vmem:[#allocation5 + $0x118] sm:$0xff]  ;;  %v70_v30 = vld [vmem:[#allocation5 + $0x100] sm:$0xff]  ;;  %v72_v31 = vld [vmem:[#allocation5 + $0x110] sm:$0xff] }
  0x25   :  { %188 = vmatprep.subr.mxu0 %v79_v20  ;;  %259 = vmatprep.subr.mxu1 %v81_v21  ;;  %v67_v32 = vld [vmem:[#allocation5 + $0xe8] sm:$0xff]  ;;  %v69_v33 = vld [vmem:[#allocation5 + $0xf8] sm:$0xff]  ;;  %v66_v34 = vld [vmem:[#allocation5 + $0xe0] sm:$0xff] }
  0x26   :  { %189 = vmatpush1.msra.mxu0 %v78_v22  ;;  %260 = vmatpush1.msra.mxu1 %v80_v23  ;;  %v68_v35 = vld [vmem:[#allocation5 + $0xf0] sm:$0xff]  ;;  %v63_v36 = vld [vmem:[#allocation5 + $0xc8] sm:$0xff]  ;;  %v65_v37 = vld [vmem:[#allocation5 + $0xd8] sm:$0xff] }
  0x27   :  { %190 = vmatprep.subr.mxu0 %v75_v24  ;;  %261 = vmatprep.subr.mxu1 %v77_v25  ;;  %v62_v38 = vld [vmem:[#allocation5 + $0xc0] sm:$0xff]  ;;  %v64_v39 = vld [vmem:[#allocation5 + $0xd0] sm:$0xff]  ;;  %v59_v40 = vld [vmem:[#allocation5 + $0xa8] sm:$0xff] }
  0x28   :  { %191 = vmatpush1.msra.mxu0 %v74_v26  ;;  %262 = vmatpush1.msra.mxu1 %v76_v27  ;;  %v61_v41 = vld [vmem:[#allocation5 + $0xb8] sm:$0xff]  ;;  %v58_v42 = vld [vmem:[#allocation5 + $0xa0] sm:$0xff]  ;;  %v60_v43 = vld [vmem:[#allocation5 + $0xb0] sm:$0xff] }
  0x29   :  { %192 = vmatprep.subr.mxu0 %v71_v28  ;;  %263 = vmatprep.subr.mxu1 %v73_v29  ;;  %v55_v44 = vld [vmem:[#allocation5 + $0x88] sm:$0xff]  ;;  %v57_v45 = vld [vmem:[#allocation5 + $0x98] sm:$0xff]  ;;  %v54_v46 = vld [vmem:[#allocation5 + $0x80] sm:$0xff] }
  0x2a   :  { %193 = vmatpush1.msra.mxu0 %v70_v30  ;;  %264 = vmatpush1.msra.mxu1 %v72_v31  ;;  %v56_v47 = vld [vmem:[#allocation5 + $0x90] sm:$0xff]  ;;  %v51_v48 = vld [vmem:[#allocation5 + $0x68] sm:$0xff]  ;;  %v53_v49 = vld [vmem:[#allocation5 + $0x78] sm:$0xff] }
  0x2b   :  { %194 = vmatprep.subr.mxu0 %v67_v32  ;;  %265 = vmatprep.subr.mxu1 %v69_v33  ;;  %v50_v50 = vld [vmem:[#allocation5 + $0x60] sm:$0xff]  ;;  %v52_v51 = vld [vmem:[#allocation5 + $0x70] sm:$0xff]  ;;  %v47_v52 = vld [vmem:[#allocation5 + $0x48] sm:$0xff] }
  0x2c   :  { %195 = vmatpush1.msra.mxu0 %v66_v34  ;;  %266 = vmatpush1.msra.mxu1 %v68_v35  ;;  %v49_v53 = vld [vmem:[#allocation5 + $0x58] sm:$0xff]  ;;  %v46_v54 = vld [vmem:[#allocation5 + $0x40] sm:$0xff]  ;;  %v48_v55 = vld [vmem:[#allocation5 + $0x50] sm:$0xff] }
  0x2d   :  { %196 = vmatprep.subr.mxu0 %v63_v36  ;;  %267 = vmatprep.subr.mxu1 %v65_v37  ;;  %v43_v56 = vld [vmem:[#allocation5 + $0x28] sm:$0xff]  ;;  %v45_v57 = vld [vmem:[#allocation5 + $0x38] sm:$0xff]  ;;  %v42_v58 = vld [vmem:[#allocation5 + $0x20] sm:$0xff] }
  0x2e   :  { %197 = vmatpush1.msra.mxu0 %v62_v38  ;;  %268 = vmatpush1.msra.mxu1 %v64_v39  ;;  %v44_v59 = vld [vmem:[#allocation5 + $0x30] sm:$0xff]  ;;  %v39_v60 = vld [vmem:[#allocation5 + $0x8] sm:$0xff]  ;;  %v41_v61 = vld [vmem:[#allocation5 + $0x18] sm:$0xff]  ;;  %v168_v38 = vlaneseq }
  0x2f   :  { %198 = vmatprep.subr.mxu0 %v59_v40  ;;  %269 = vmatprep.subr.mxu1 %v61_v41  ;;  %v38_v62 = vld [vmem:[#allocation5] sm:$0xff]  ;;  %v40_v63 = vld [vmem:[#allocation5 + $0x10] sm:$0xff]  ;;  %v163_v0 = vld [vmem:[#allocation5 + $0x3e8] sm:$0xff] }
  0x30   :  { %199 = vmatpush1.msra.mxu0 %v58_v42  ;;  %270 = vmatpush1.msra.mxu1 %v60_v43  ;;  %v165_v1 = vld [vmem:[#allocation5 + $0x3f8] sm:$0xff]  ;;  %v162_v2 = vld [vmem:[#allocation5 + $0x3e0] sm:$0xff]  ;;  %v164_v3 = vld [vmem:[#allocation5 + $0x3f0] sm:$0xff]  ;;  %vm367_vm0 = vcmp.lt.s32.totalorder %v168_v38, 512 }
  0x31   :  { %200 = vmatprep.subr.mxu0 %v55_v44  ;;  %271 = vmatprep.subr.mxu1 %v57_v45  ;;  %v159_v4 = vld [vmem:[#allocation5 + $0x3c8] sm:$0xff]  ;;  %v161_v5 = vld [vmem:[#allocation5 + $0x3d8] sm:$0xff]  ;;  %v158_v6 = vld [vmem:[#allocation5 + $0x3c0] sm:$0xff] }
  0x32   :  { %201 = vmatpush1.msra.mxu0 %v54_v46  ;;  %272 = vmatpush1.msra.mxu1 %v56_v47  ;;  %v160_v7 = vld [vmem:[#allocation5 + $0x3d0] sm:$0xff]  ;;  %v155_v8 = vld [vmem:[#allocation5 + $0x3a8] sm:$0xff]  ;;  %v157_v9 = vld [vmem:[#allocation5 + $0x3b8] sm:$0xff]  ;;  %v486_v47 = vshrl.u32 %v168_v38, 7 }
  0x33   :  { %202 = vmatprep.subr.mxu0 %v51_v48  ;;  %273 = vmatprep.subr.mxu1 %v53_v49  ;;  %v154_v10 = vld [vmem:[#allocation5 + $0x3a0] sm:$0xff]  ;;  %v156_v11 = vld [vmem:[#allocation5 + $0x3b0] sm:$0xff]  ;;  %v151_v12 = vld [vmem:[#allocation5 + $0x388] sm:$0xff] }
  0x34   :  { %203 = vmatpush1.msra.mxu0 %v50_v50  ;;  %274 = vmatpush1.msra.mxu1 %v52_v51  ;;  %v153_v13 = vld [vmem:[#allocation5 + $0x398] sm:$0xff]  ;;  %v150_v14 = vld [vmem:[#allocation5 + $0x380] sm:$0xff]  ;;  %v152_v15 = vld [vmem:[#allocation5 + $0x390] sm:$0xff] }
  0x35   :  { %204 = vmatprep.subr.mxu0 %v47_v52  ;;  %275 = vmatprep.subr.mxu1 %v49_v53  ;;  %v147_v16 = vld [vmem:[#allocation5 + $0x368] sm:$0xff]  ;;  %v149_v17 = vld [vmem:[#allocation5 + $0x378] sm:$0xff]  ;;  %v146_v18 = vld [vmem:[#allocation5 + $0x360] sm:$0xff] }
  0x36   :  { %205 = vmatpush1.msra.mxu0 %v46_v54  ;;  %276 = vmatpush1.msra.mxu1 %v48_v55  ;;  %v148_v19 = vld [vmem:[#allocation5 + $0x370] sm:$0xff]  ;;  %v143_v20 = vld [vmem:[#allocation5 + $0x348] sm:$0xff]  ;;  %v145_v21 = vld [vmem:[#allocation5 + $0x358] sm:$0xff] }
  0x37   :  { %206 = vmatprep.subr.mxu0 %v43_v56  ;;  %277 = vmatprep.subr.mxu1 %v45_v57  ;;  %v142_v22 = vld [vmem:[#allocation5 + $0x340] sm:$0xff]  ;;  %v144_v23 = vld [vmem:[#allocation5 + $0x350] sm:$0xff]  ;;  %v139_v24 = vld [vmem:[#allocation5 + $0x328] sm:$0xff]  ;;  %v174_v56 = vsub.s32 1, %v486_v47 }
  0x38   :  { %207 = vmatpush1.msra.mxu0 %v42_v58  ;;  %278 = vmatpush1.msra.mxu1 %v44_v59  ;;  %v141_v25 = vld [vmem:[#allocation5 + $0x338] sm:$0xff]  ;;  %v138_v26 = vld [vmem:[#allocation5 + $0x320] sm:$0xff]  ;;  %v140_v27 = vld [vmem:[#allocation5 + $0x330] sm:$0xff] }
  0x39   :  { %208 = vmatprep.subr.mxu0 %v39_v60  ;;  %279 = vmatprep.subr.mxu1 %v41_v61  ;;  %v135_v28 = vld [vmem:[#allocation5 + $0x308] sm:$0xff]  ;;  %v137_v29 = vld [vmem:[#allocation5 + $0x318] sm:$0xff]  ;;  %v134_v30 = vld [vmem:[#allocation5 + $0x300] sm:$0xff] }
  0x3a   :  { %209 = vmatpush1.msra.mxu0 %v38_v62  ;;  %280 = vmatpush1.msra.mxu1 %v40_v63  ;;  %v136_v31 = vld [vmem:[#allocation5 + $0x310] sm:$0xff]  ;;  %v131_v32 = vld [vmem:[#allocation5 + $0x2e8] sm:$0xff]  ;;  %v133_v33 = vld [vmem:[#allocation5 + $0x2f8] sm:$0xff]  ;;  %v170_v62 = vsub.s32 0, %v486_v47 }
  0x3b   :  { %210 = vmatprep.subr.mxu0 %v163_v0  ;;  %281 = vmatprep.subr.mxu1 %v165_v1  ;;  %v130_v34 = vld [vmem:[#allocation5 + $0x2e0] sm:$0xff]  ;;  %v132_v35 = vld [vmem:[#allocation5 + $0x2f0] sm:$0xff]  ;;  %v127_v36 = vld [vmem:[#allocation5 + $0x2c8] sm:$0xff] }
  0x3c   :  { %211 = vmatpush2.msra.mxu0 %v162_v2  ;;  %282 = vmatpush2.msra.mxu1 %v164_v3  ;;  %v129_v37 = vld [vmem:[#allocation5 + $0x2d8] sm:$0xff]  ;;  %v126_v39 = vld [vmem:[#allocation5 + $0x2c0] sm:$0xff]  ;;  %v128_v40 = vld [vmem:[#allocation5 + $0x2d0] sm:$0xff] }
  0x3d   :  { %212 = vmatprep.subr.mxu0 %v159_v4  ;;  %283 = vmatprep.subr.mxu1 %v161_v5  ;;  %v123_v41 = vld [vmem:[#allocation5 + $0x2a8] sm:$0xff]  ;;  %v125_v42 = vld [vmem:[#allocation5 + $0x2b8] sm:$0xff]  ;;  %v122_v43 = vld [vmem:[#allocation5 + $0x2a0] sm:$0xff] }
  0x3e   :  { %213 = vmatpush2.msra.mxu0 %v158_v6  ;;  %284 = vmatpush2.msra.mxu1 %v160_v7  ;;  %v124_v44 = vld [vmem:[#allocation5 + $0x2b0] sm:$0xff]  ;;  %v119_v45 = vld [vmem:[#allocation5 + $0x288] sm:$0xff]  ;;  %v121_v46 = vld [vmem:[#allocation5 + $0x298] sm:$0xff] }
  0x3f   :  { %214 = vmatprep.subr.mxu0 %v155_v8  ;;  %285 = vmatprep.subr.mxu1 %v157_v9  ;;  %v118_v48 = vld [vmem:[#allocation5 + $0x280] sm:$0xff]  ;;  %v120_v49 = vld [vmem:[#allocation5 + $0x290] sm:$0xff]  ;;  %v115_v50 = vld [vmem:[#allocation5 + $0x268] sm:$0xff]  ;;  %v462_v9 = vmov 1966171168  }
  0x40   :  { %215 = vmatpush2.msra.mxu0 %v154_v10  ;;  %286 = vmatpush2.msra.mxu1 %v156_v11  ;;  %v117_v51 = vld [vmem:[#allocation5 + $0x278] sm:$0xff]  ;;  %v114_v52 = vld [vmem:[#allocation5 + $0x260] sm:$0xff]  ;;  %v116_v53 = vld [vmem:[#allocation5 + $0x270] sm:$0xff]  ;;  %v343_v10 = vunpack.c.l.s4 %v462_v9 }
  0x41   :  { %216 = vmatprep.subr.mxu0 %v151_v12  ;;  %287 = vmatprep.subr.mxu1 %v153_v13  ;;  %v111_v54 = vld [vmem:[#allocation5 + $0x248] sm:$0xff]  ;;  %v113_v55 = vld [vmem:[#allocation5 + $0x258] sm:$0xff]  ;;  %v110_v57 = vld [vmem:[#allocation5 + $0x240] sm:$0xff] }
  0x42   :  { %217 = vmatpush2.msra.mxu0 %v150_v14  ;;  %288 = vmatpush2.msra.mxu1 %v152_v15  ;;  %v112_v58 = vld [vmem:[#allocation5 + $0x250] sm:$0xff]  ;;  %v166_v59 = vld [vmem:[#allocation2] sm:$0x3]  ;;  %v107_v60 = vld [vmem:[#allocation5 + $0x228] sm:$0xff] }
  0x43   :  { %218 = vmatprep.subr.mxu0 %v147_v16  ;;  %289 = vmatprep.subr.mxu1 %v149_v17  ;;  %v109_v61 = vld [vmem:[#allocation5 + $0x238] sm:$0xff]  ;;  %v106_v63 = vld [vmem:[#allocation5 + $0x220] sm:$0xff]  ;;  %v108_v0 = vld [vmem:[#allocation5 + $0x230] sm:$0xff]  ;;  %v175_v3 = vrot.slane %v166_v59, %v174_v56  ;;  %v171_v5 = vrot.slane %v166_v59, %v170_v62 }
  0x44   :  { %219 = vmatpush2.msra.mxu0 %v146_v18  ;;  %290 = vmatpush2.msra.mxu1 %v148_v19  ;;  %v103_v1 = vld [vmem:[#allocation5 + $0x208] sm:$0xff]  ;;  %v105_v2 = vld [vmem:[#allocation5 + $0x218] sm:$0xff]  ;;  %v102_v4 = vld [vmem:[#allocation5 + $0x200] sm:$0xff]  ;;  %v344_v19 = vunpack.c.0.s8 %v343_v10 }
  0x45   :  { %220 = vmatprep.subr.mxu0 %v143_v20  ;;  %291 = vmatprep.subr.mxu1 %v145_v21  ;;  %v104_v6 = vld [vmem:[#allocation5 + $0x210] sm:$0xff] }
  0x46   :  { %221 = vmatpush2.msra.mxu0 %v142_v22  ;;  %292 = vmatpush2.msra.mxu1 %v144_v23 }
  0x47   :  { %222 = vmatprep.subr.mxu0 %v139_v24  ;;  %293 = vmatprep.subr.mxu1 %v141_v25 }
  0x48   :  { %223 = vmatpush2.msra.mxu0 %v138_v26  ;;  %294 = vmatpush2.msra.mxu1 %v140_v27 }
  0x49   :  { %224 = vmatprep.subr.mxu0 %v135_v28  ;;  %295 = vmatprep.subr.mxu1 %v137_v29  ;;  %v347_v29 = vsub.s32 %v344_v19, %v486_v47 }
  0x4a   :  { %225 = vmatpush2.msra.mxu0 %v134_v30  ;;  %296 = vmatpush2.msra.mxu1 %v136_v31 }
  0x4b   :  { %226 = vmatprep.subr.mxu0 %v131_v32  ;;  %297 = vmatprep.subr.mxu1 %v133_v33 }
  0x4c   :  { %227 = vmatpush2.msra.mxu0 %v130_v34  ;;  %298 = vmatpush2.msra.mxu1 %v132_v35 }
  0x4d   :  { %228 = vmatprep.subr.mxu0 %v127_v36  ;;  %299 = vmatprep.subr.mxu1 %v129_v37 }
  0x4e   :  { %229 = vmatpush2.msra.mxu0 %v126_v39  ;;  %300 = vmatpush2.msra.mxu1 %v128_v40 }
  0x4f   :  { %230 = vmatprep.subr.mxu0 %v123_v41  ;;  %301 = vmatprep.subr.mxu1 %v125_v42 }
  0x50   :  { %231 = vmatpush2.msra.mxu0 %v122_v43  ;;  %302 = vmatpush2.msra.mxu1 %v124_v44 }
  0x51   :  { %232 = vmatprep.subr.mxu0 %v119_v45  ;;  %303 = vmatprep.subr.mxu1 %v121_v46 }
  0x52   :  { %233 = vmatpush2.msra.mxu0 %v118_v48  ;;  %304 = vmatpush2.msra.mxu1 %v120_v49 }
  0x53   :  { %234 = vmatprep.subr.mxu0 %v115_v50  ;;  %305 = vmatprep.subr.mxu1 %v117_v51 }
  0x54   :  { %235 = vmatpush2.msra.mxu0 %v114_v52  ;;  %306 = vmatpush2.msra.mxu1 %v116_v53 }
  0x55   :  { %236 = vmatprep.subr.mxu0 %v111_v54  ;;  %307 = vmatprep.subr.mxu1 %v113_v55 }
  0x56   :  { %237 = vmatpush2.msra.mxu0 %v110_v57  ;;  %308 = vmatpush2.msra.mxu1 %v112_v58 }
  0x57   :  { %238 = vmatprep.subr.mxu0 %v107_v60  ;;  %309 = vmatprep.subr.mxu1 %v109_v61 }
  0x58   :  { %239 = vmatpush2.msra.mxu0 %v106_v63  ;;  %310 = vmatpush2.msra.mxu1 %v108_v0 }
  0x59   :  { %240 = vmatprep.subr.mxu0 %v103_v1  ;;  %311 = vmatprep.subr.mxu1 %v105_v2 }
  0x5a   :  { %241 = vmatpush2.msra.mxu0 %v102_v4  ;;  %242 = vmatprep.mubr.f32.mxu0 %v175_v3 }
  0x5b   :  { %312 = vmatpush2.msra.mxu1 %v104_v6  ;;  %313 = vmatprep.mubr.f32.mxu1 %v175_v3 }
  0x5c   :  { %243 = vmatmul.mubr.f32.vlgmr.msra.gmra.mxu0 %v171_v5  ;;  %314 = vmatmul.mubr.f32.vlgmr.msra.gmra.mxu1 %v171_v5 }
 0x11c   :  { %v244_v7 = vpop.f32.mrf.mxu0  ;;  %v315_v8 = vpop.f32.mrf.mxu1 }
 0x11d   :  { %v320_v11 = vmax.f32 %v244_v7, 0.0  ;;  %v322_v12 = vmax.f32 %v315_v8, 0.0 }
 0x11e   :  { %v246_v13 = vpop.f32.mrf.mxu0  ;;  %v317_v14 = vpop.f32.mrf.mxu1 }
 0x11f   :  { %v324_v15 = vmin.f32 %v320_v11, 6.0  ;;  %v326_v16 = vmin.f32 %v322_v12, 6.0  ;;  %v321_v17 = vmax.f32 %v246_v13, 0.0  ;;  %v323_v18 = vmax.f32 %v317_v14, 0.0 }
 0x121   :  { %v328_v20 = vmul.f32 %v324_v15, %v244_v7  ;;  %v330_v21 = vmul.f32 %v326_v16, %v315_v8  ;;  %v325_v22 = vmin.f32 %v321_v17, 6.0  ;;  %v327_v23 = vmin.f32 %v323_v18, 6.0 }
 0x123   :  { %v329_v24 = vmul.f32 %v325_v22, %v246_v13  ;;  %v331_v25 = vmul.f32 %v327_v23, %v317_v14  ;;  %v332_v26 = vmul.f32 0.16666667, %v328_v20  ;;  %v334_v27 = vmul.f32 0.16666667, %v330_v21 }
 0x125   :  { %v333_v28 = vmul.f32 0.16666667, %v329_v24  ;;  %v335_v30 = vmul.f32 0.16666667, %v331_v25 }
 0x127   :  { %v340_v31 = vcombine.low %v332_v26, %v333_v28  ;;  %v341_v32 = vcombine.low %v334_v27, %v335_v30 }
 0x129   :  { %v348_v33 = vrot.slane %v340_v31, %v347_v29  ;;  %v355_v34 = vrot.slane %v341_v32, %v347_v29 }
 0x12b   :  { %v356_v35 = vcombine.low %v348_v33, %v355_v34 }
 0x12d   :  { %v363_v36 = vrot.slane %v356_v35, %v347_v29 }
 0x12f   :  { %369 = vst.msk [vmem:[#allocation7] sm:$0xf] %vm367_vm0, %v363_v36 }
 0x130   :  { %443 = shalt.err (!%p440_p0)
}
 0x131   :  { %379 = dma.vmem_to_hbm [thread:$0]  %s377_s1, 64, %s497_s2, [#allocation4]  }
 0x132   :  { %456 = dma.done.wait [#allocation4], 64  }
 0x133   :  { %457 = vsyncadd [#allocation4], 4294967232 }
 0x134   :  { %383 = vsyncpa [#allocation3], 1 }
 0x135   :  { %384 = vsyncpa [#allocation6], 1 }
 0x136   :  { %385 = vsyncpa [#allocation4], 1 }

</bundles_post_ra>
